<compile_context>
chip_gen: v7x
topology: tpu7x:2x2x1
jax: 0.10.0
libtpu: 0.0.40
codegen_flags: <defaults>
</compile_context>

<pallas_src>
import numpy as np
import jax
import jax.numpy as jnp
from jax.experimental import pallas as pl
from jax.experimental.pallas import tpu as pltpu

# ---------------- config (mirrors the PyTorch module's __init__) ------------
N_MELS = 16          # config.n_mels
TIME = 16            # spectrogram frames fed to forward()
CNN_OUT = 4          # config.cnn_out_channels
KH, KW = 4, 4        # config.kernel_size
SH, SW = 2, 2        # config.stride
HIDDEN = 32          # config.hidden_size
NUM_CLASSES = 2      # config.num_classes
BATCH = 2

F_OUT = (N_MELS - KH) // SH + 1           # conv_out_frequency
T_OUT = (TIME - KW) // SW + 1             # conv output time steps
KPATCH = F_OUT * KH * KW                  # im2col patch width (in_channels == 1)
NFEAT = CNN_OUT * F_OUT                   # GRU input size


# ------------------------------- kernel -------------------------------------
def crnn_kernel(patches_ref, conv_wb_ref, gru_in_ref, gru_h_ref, head_ref, out_ref):
    f32 = jnp.float32
    H = HIDDEN
    B = out_ref.shape[0]
    T = patches_ref.shape[0] // B

    # ---- unpack the packed weight blocks (static slices of loaded values) ---
    conv_wb = conv_wb_ref[...]
    wbig, bfeat = conv_wb[:KPATCH, :], conv_wb[KPATCH:, :]           # (KPATCH,NFEAT), (1,NFEAT)
    gin = gru_in_ref[...]
    wih, bih = gin[:NFEAT, :], gin[NFEAT:, :]                        # (NFEAT,3H), (1,3H)
    ghh = gru_h_ref[...]
    whh, bhh = ghh[:H, :], ghh[H:, :]                                # (H,3H), (1,3H)
    head = head_ref[...]
    w1, b1 = head[:H, :H], head[H:H + 1, :H]                         # (H,H), (1,H)
    wc, bc = head[:H, H:], head[H:H + 1, H:]                         # (H,NC), (1,NC)
    w2, b2 = head[H + 1:H + 2, :H], head[H + 1:H + 2, H:H + 1]       # (1,H), (1,1)

    # ---- conv as im2col matmul, batched over all (t, b) rows (time-major) ---
    feat = jnp.dot(patches_ref[...], wbig, preferred_element_type=f32) + bfeat   # (T*B, NFEAT)

    # ---- fused GRU input projections for all gates & all timesteps ----------
    xg = jnp.dot(feat, wih, preferred_element_type=f32) + bih        # (T*B, 3H), gates r|z|n

    # ---- sequential GRU recurrence, h0 = 0, state kept in registers ---------
    h = jnp.zeros((B, H), dtype=f32)
    hs = []
    for t in range(T):                                               # static trip count
        xg_t = xg[t * B:(t + 1) * B, :]                              # (B, 3H) contiguous rows
        hg = jnp.dot(h, whh, preferred_element_type=f32) + bhh       # (B, 3H): one matmul/step
        r = jax.nn.sigmoid(xg_t[:, :H] + hg[:, :H])
        z = jax.nn.sigmoid(xg_t[:, H:2 * H] + hg[:, H:2 * H])
        n = jnp.tanh(xg_t[:, 2 * H:] + r * hg[:, 2 * H:])
        h = (1.0 - z) * n + z * h
        hs.append(h)

    # ---- attention: 2-layer energy MLP, softmax over time, weighted sum -----
    g = jnp.concatenate(hs, axis=0)                                  # (T*B, H) time-major
    th = jnp.tanh(jnp.dot(g, w1, preferred_element_type=f32) + b1)   # (T*B, H)
    e_all = jnp.sum(th * w2, axis=-1, keepdims=True) + b2            # (T*B, 1)
    e = jnp.concatenate([e_all[t * B:(t + 1) * B, :] for t in range(T)], axis=1)  # (B, T)
    e = e - jnp.max(e, axis=1, keepdims=True)
    a = jnp.exp(e)
    alpha = a / jnp.sum(a, axis=1, keepdims=True)                    # (B, T)
    ctx = jnp.zeros((B, H), dtype=f32)
    for t in range(T):
        ctx = ctx + hs[t] * alpha[:, t:t + 1]                        # (B, H)

    # ---- classifier ----------------------------------------------------------
    out_ref[...] = jnp.dot(ctx, wc, preferred_element_type=f32) + bc


# ------------------------------- wrapper -------------------------------------
def extract_patches(x):
    """(B, n_mels, T) -> (T_OUT*B, F_OUT*KH*KW) time-major im2col patches (glue)."""
    B = x.shape[0]
    cols = []
    for f in range(F_OUT):
        for i in range(KH):
            for j in range(KW):
                cols.append(x[:, f * SH + i, j:j + (T_OUT - 1) * SW + 1:SW])  # (B, T_OUT)
    p = jnp.stack(cols, axis=-1)                                     # (B, T_OUT, KPATCH)
    return p.transpose(1, 0, 2).reshape(T_OUT * B, KPATCH)


def stream_crnn_forward(x, kparams):
    B = x.shape[0]
    patches = extract_patches(x)                                     # (T_OUT*B, KPATCH)
    args = [patches, kparams["conv_wb"], kparams["gru_in"],
            kparams["gru_h"], kparams["head"]]
    in_specs = [pl.BlockSpec(a.shape, lambda i: (0, 0)) for a in args]

    out = pl.pallas_call(
        crnn_kernel,
        out_shape=jax.ShapeDtypeStruct((B, NUM_CLASSES), jnp.float32),
        grid=(1,),                                                   # single step, batch folded in
        in_specs=in_specs,
        out_specs=pl.BlockSpec((B, NUM_CLASSES), lambda i: (0, 0)),
        compiler_params=pltpu.CompilerParams(dimension_semantics=("arbitrary",)),
    )(*args)
    return out                                                       # (B, NUM_CLASSES)


# ------------------------------ parameters -----------------------------------
def init_params(key):
    ks = jax.random.split(key, 12)

    def u(k, shape, scale):
        return jax.random.uniform(k, shape, jnp.float32, -scale, scale)

    kconv = 1.0 / np.sqrt(KH * KW)
    kh = 1.0 / np.sqrt(HIDDEN)
    raw = dict(
        wconv=u(ks[0], (CNN_OUT, 1, KH, KW), kconv),
        bconv=u(ks[1], (CNN_OUT,), kconv),
        wih=u(ks[2], (NFEAT, 3 * HIDDEN), kh),     # gates ordered (r, z, n)
        whh=u(ks[3], (HIDDEN, 3 * HIDDEN), kh),
        bih=u(ks[4], (3 * HIDDEN,), kh),
        bhh=u(ks[5], (3 * HIDDEN,), kh),
        w1=u(ks[6], (HIDDEN, HIDDEN), kh),
        b1=u(ks[7], (HIDDEN,), kh),
        w2=u(ks[8], (HIDDEN,), kh),                # energy second Linear (H -> 1)
        b2=u(ks[9], (1,), kh),
        wc=u(ks[10], (HIDDEN, NUM_CLASSES), kh),
        bc=u(ks[11], (NUM_CLASSES,), kh),
    )

    H = HIDDEN

    # conv weight -> block im2col matrix Wbig; conv bias appended as last row
    wbig = np.zeros((KPATCH, NFEAT), np.float32)
    wconv_np = np.asarray(raw["wconv"])
    for f in range(F_OUT):
        for c in range(CNN_OUT):
            wbig[f * KH * KW:(f + 1) * KH * KW, c * F_OUT + f] = wconv_np[c, 0].reshape(-1)
    bfeat = np.repeat(np.asarray(raw["bconv"]), F_OUT)[None, :]      # (1, NFEAT)
    conv_wb = jnp.asarray(np.concatenate([wbig, bfeat], axis=0))     # (KPATCH+1, NFEAT)

    # fused GRU gate blocks: [W ; b]
    gru_in = jnp.concatenate([raw["wih"], raw["bih"][None, :]], axis=0)   # (NFEAT+1, 3H)
    gru_h = jnp.concatenate([raw["whh"], raw["bhh"][None, :]], axis=0)    # (H+1, 3H)

    # attention + classifier head packed into one (H+2, H+NC) block:
    #   rows 0..H-1 : [ w1 | wc ]
    #   row  H      : [ b1 | bc ]
    #   row  H+1    : [ w2 | b2 0... ]
    head = np.zeros((H + 2, H + NUM_CLASSES), np.float32)
    head[:H, :H] = np.asarray(raw["w1"])
    head[H, :H] = np.asarray(raw["b1"])
    head[:H, H:] = np.asarray(raw["wc"])
    head[H, H:] = np.asarray(raw["bc"])
    head[H + 1, :H] = np.asarray(raw["w2"])
    head[H + 1, H] = float(np.asarray(raw["b2"])[0])
    head = jnp.asarray(head)

    kparams = dict(conv_wb=conv_wb, gru_in=gru_in, gru_h=gru_h, head=head)
    return raw, kparams


# ------------------------------ pure-JAX reference ----------------------------
def reference_forward(x, raw):
    B = x.shape[0]
    H = HIDDEN
    conv = jax.lax.conv_general_dilated(
        x[:, None, :, :], raw["wconv"], (SH, SW), "VALID",
        dimension_numbers=("NCHW", "OIHW", "NCHW"))
    conv = conv + raw["bconv"][None, :, None, None]                  # (B, C, F_OUT, T_OUT)
    feat = conv.reshape(B, CNN_OUT * F_OUT, T_OUT).transpose(0, 2, 1)  # (B, T_OUT, NFEAT)

    h = jnp.zeros((B, H), jnp.float32)
    outs = []
    for t in range(T_OUT):
        xt = feat[:, t, :]
        gi = xt @ raw["wih"] + raw["bih"]
        gh = h @ raw["whh"] + raw["bhh"]
        r = jax.nn.sigmoid(gi[:, :H] + gh[:, :H])
        z = jax.nn.sigmoid(gi[:, H:2 * H] + gh[:, H:2 * H])
        n = jnp.tanh(gi[:, 2 * H:] + r * gh[:, 2 * H:])
        h = (1.0 - z) * n + z * h
        outs.append(h)
    g = jnp.stack(outs, axis=1)                                      # (B, T_OUT, H)

    e = jnp.tanh(g @ raw["w1"] + raw["b1"]) @ raw["w2"][:, None] + raw["b2"]
    alpha = jax.nn.softmax(e, axis=-2)
    ctx = jnp.sum(g * alpha, axis=-2)
    return ctx @ raw["wc"] + raw["bc"]


# ---------------------------------- main --------------------------------------
if __name__ == "__main__":
    key = jax.random.PRNGKey(0)
    kx, kp = jax.random.split(key)
    x = jax.random.normal(kx, (BATCH, N_MELS, TIME), jnp.float32)

    raw, kparams = init_params(kp)

    out = stream_crnn_forward(x, kparams)
    out = jax.block_until_ready(out)

    ref = jax.block_until_ready(reference_forward(x, raw))
    np.testing.assert_allclose(np.asarray(out), np.asarray(ref), rtol=1e-2, atol=1e-2)

    print("KERNEL_OK")
</pallas_src>

<mosaic_0001>
module attributes {stable_mosaic.version = 11 : i64} {
  func.func @crnn_kernel(%arg0: i32, %arg1: memref<14x112xf32, #tpu.memory_space<vmem>>, %arg2: memref<113x28xf32, #tpu.memory_space<vmem>>, %arg3: memref<29x96xf32, #tpu.memory_space<vmem>>, %arg4: memref<33x96xf32, #tpu.memory_space<vmem>>, %arg5: memref<34x34xf32, #tpu.memory_space<vmem>>, %arg6: memref<2x2xf32, #tpu.memory_space<vmem>>) attributes {dimension_semantics = [#tpu.dimension_semantics<arbitrary>], iteration_bounds = array<i64: 1>, scalar_prefetch = 0 : i64, scratch_operands = 0 : i64, tpu.core_type = #tpu.core_type<tc>, window_params = [{pipeline_mode = #tpu.pipeline_mode<synchronous>, transform_indices = @transform_0, window_bounds = array<i64: 14, 112>}, {pipeline_mode = #tpu.pipeline_mode<synchronous>, transform_indices = @transform_1, window_bounds = array<i64: 113, 28>}, {pipeline_mode = #tpu.pipeline_mode<synchronous>, transform_indices = @transform_2, window_bounds = array<i64: 29, 96>}, {pipeline_mode = #tpu.pipeline_mode<synchronous>, transform_indices = @transform_3, window_bounds = array<i64: 33, 96>}, {pipeline_mode = #tpu.pipeline_mode<synchronous>, transform_indices = @transform_4, window_bounds = array<i64: 34, 34>}, {pipeline_mode = #tpu.pipeline_mode<synchronous>, transform_indices = @transform_5, window_bounds = array<i64: 2, 2>}]} {
    %c0 = arith.constant 0 : index
    %c0_0 = arith.constant 0 : index
    %0 = vector.load %arg2[%c0, %c0_0] : memref<113x28xf32, #tpu.memory_space<vmem>>, vector<113x28xf32>
    %1 = vector.extract_strided_slice %0 {offsets = [0, 0], sizes = [112, 28], strides = [1, 1]} : vector<113x28xf32> to vector<112x28xf32>
    %2 = vector.extract_strided_slice %0 {offsets = [112, 0], sizes = [1, 28], strides = [1, 1]} : vector<113x28xf32> to vector<1x28xf32>
    %c0_1 = arith.constant 0 : index
    %c0_2 = arith.constant 0 : index
    %3 = vector.load %arg3[%c0_1, %c0_2] : memref<29x96xf32, #tpu.memory_space<vmem>>, vector<29x96xf32>
    %4 = vector.extract_strided_slice %3 {offsets = [0, 0], sizes = [28, 96], strides = [1, 1]} : vector<29x96xf32> to vector<28x96xf32>
    %5 = vector.extract_strided_slice %3 {offsets = [28, 0], sizes = [1, 96], strides = [1, 1]} : vector<29x96xf32> to vector<1x96xf32>
    %c0_3 = arith.constant 0 : index
    %c0_4 = arith.constant 0 : index
    %6 = vector.load %arg4[%c0_3, %c0_4] : memref<33x96xf32, #tpu.memory_space<vmem>>, vector<33x96xf32>
    %7 = vector.extract_strided_slice %6 {offsets = [0, 0], sizes = [32, 96], strides = [1, 1]} : vector<33x96xf32> to vector<32x96xf32>
    %8 = vector.extract_strided_slice %6 {offsets = [32, 0], sizes = [1, 96], strides = [1, 1]} : vector<33x96xf32> to vector<1x96xf32>
    %c0_5 = arith.constant 0 : index
    %c0_6 = arith.constant 0 : index
    %9 = vector.load %arg5[%c0_5, %c0_6] : memref<34x34xf32, #tpu.memory_space<vmem>>, vector<34x34xf32>
    %10 = vector.extract_strided_slice %9 {offsets = [0, 0], sizes = [32, 32], strides = [1, 1]} : vector<34x34xf32> to vector<32x32xf32>
    %11 = vector.extract_strided_slice %9 {offsets = [32, 0], sizes = [1, 32], strides = [1, 1]} : vector<34x34xf32> to vector<1x32xf32>
    %12 = vector.extract_strided_slice %9 {offsets = [0, 32], sizes = [32, 2], strides = [1, 1]} : vector<34x34xf32> to vector<32x2xf32>
    %13 = vector.extract_strided_slice %9 {offsets = [32, 32], sizes = [1, 2], strides = [1, 1]} : vector<34x34xf32> to vector<1x2xf32>
    %14 = vector.extract_strided_slice %9 {offsets = [33, 0], sizes = [1, 32], strides = [1, 1]} : vector<34x34xf32> to vector<1x32xf32>
    %15 = vector.extract_strided_slice %9 {offsets = [33, 32], sizes = [1, 1], strides = [1, 1]} : vector<34x34xf32> to vector<1x1xf32>
    %c0_7 = arith.constant 0 : index
    %c0_8 = arith.constant 0 : index
    %16 = vector.load %arg1[%c0_7, %c0_8] : memref<14x112xf32, #tpu.memory_space<vmem>>, vector<14x112xf32>
    %cst = arith.constant dense<0.000000e+00> : vector<14x28xf32>
    %17 = tpu.matmul %16, %1, %cst {dimension_numbers = #tpu.dot_dimension_numbers<[1], [0], [0], [1], [0, 0, 1, 1], [], []>} : vector<14x112xf32>, vector<112x28xf32>, vector<14x28xf32> -> vector<14x28xf32>
    %18 = vector.broadcast %2 : vector<1x28xf32> to vector<14x28xf32>
    %19 = arith.addf %17, %18 : vector<14x28xf32>
    %cst_9 = arith.constant dense<0.000000e+00> : vector<14x96xf32>
    %20 = tpu.matmul %19, %4, %cst_9 {dimension_numbers = #tpu.dot_dimension_numbers<[1], [0], [0], [1], [0, 0, 1, 1], [], []>} : vector<14x28xf32>, vector<28x96xf32>, vector<14x96xf32> -> vector<14x96xf32>
    %21 = vector.broadcast %5 : vector<1x96xf32> to vector<14x96xf32>
    %22 = arith.addf %20, %21 : vector<14x96xf32>
    %cst_10 = arith.constant 0.000000e+00 : f32
    %23 = vector.broadcast %cst_10 : f32 to vector<2x32xf32>
    %24 = vector.extract_strided_slice %22 {offsets = [0, 0], sizes = [2, 96], strides = [1, 1]} : vector<14x96xf32> to vector<2x96xf32>
    %cst_11 = arith.constant dense<0.000000e+00> : vector<2x96xf32>
    %25 = tpu.matmul %23, %7, %cst_11 {dimension_numbers = #tpu.dot_dimension_numbers<[1], [0], [0], [1], [0, 0, 1, 1], [], []>} : vector<2x32xf32>, vector<32x96xf32>, vector<2x96xf32> -> vector<2x96xf32>
    %26 = vector.broadcast %8 : vector<1x96xf32> to vector<2x96xf32>
    %27 = arith.addf %25, %26 : vector<2x96xf32>
    %28 = vector.extract_strided_slice %24 {offsets = [0, 0], sizes = [2, 32], strides = [1, 1]} : vector<2x96xf32> to vector<2x32xf32>
    %29 = vector.extract_strided_slice %27 {offsets = [0, 0], sizes = [2, 32], strides = [1, 1]} : vector<2x96xf32> to vector<2x32xf32>
    %30 = arith.addf %28, %29 : vector<2x32xf32>
    %31 = arith.negf %30 : vector<2x32xf32>
    %32 = math.exp %31 : vector<2x32xf32>
    %cst_12 = arith.constant 1.000000e+00 : f32
    %33 = vector.broadcast %cst_12 : f32 to vector<2x32xf32>
    %34 = arith.addf %33, %32 : vector<2x32xf32>
    %35 = arith.divf %33, %34 : vector<2x32xf32>
    %36 = vector.extract_strided_slice %24 {offsets = [0, 32], sizes = [2, 32], strides = [1, 1]} : vector<2x96xf32> to vector<2x32xf32>
    %37 = vector.extract_strided_slice %27 {offsets = [0, 32], sizes = [2, 32], strides = [1, 1]} : vector<2x96xf32> to vector<2x32xf32>
    %38 = arith.addf %36, %37 : vector<2x32xf32>
    %39 = arith.negf %38 : vector<2x32xf32>
    %40 = math.exp %39 : vector<2x32xf32>
    %cst_13 = arith.constant 1.000000e+00 : f32
    %41 = vector.broadcast %cst_13 : f32 to vector<2x32xf32>
    %42 = arith.addf %41, %40 : vector<2x32xf32>
    %43 = arith.divf %41, %42 : vector<2x32xf32>
    %44 = vector.extract_strided_slice %24 {offsets = [0, 64], sizes = [2, 32], strides = [1, 1]} : vector<2x96xf32> to vector<2x32xf32>
    %45 = vector.extract_strided_slice %27 {offsets = [0, 64], sizes = [2, 32], strides = [1, 1]} : vector<2x96xf32> to vector<2x32xf32>
    %46 = arith.mulf %35, %45 : vector<2x32xf32>
    %47 = arith.addf %44, %46 : vector<2x32xf32>
    %48 = math.tanh %47 : vector<2x32xf32>
    %cst_14 = arith.constant 1.000000e+00 : f32
    %49 = vector.broadcast %cst_14 : f32 to vector<2x32xf32>
    %50 = arith.subf %49, %43 : vector<2x32xf32>
    %51 = arith.mulf %50, %48 : vector<2x32xf32>
    %52 = arith.mulf %43, %23 : vector<2x32xf32>
    %53 = arith.addf %51, %52 : vector<2x32xf32>
    %54 = vector.extract_strided_slice %22 {offsets = [2, 0], sizes = [2, 96], strides = [1, 1]} : vector<14x96xf32> to vector<2x96xf32>
    %cst_15 = arith.constant dense<0.000000e+00> : vector<2x96xf32>
    %55 = tpu.matmul %53, %7, %cst_15 {dimension_numbers = #tpu.dot_dimension_numbers<[1], [0], [0], [1], [0, 0, 1, 1], [], []>} : vector<2x32xf32>, vector<32x96xf32>, vector<2x96xf32> -> vector<2x96xf32>
    %56 = vector.broadcast %8 : vector<1x96xf32> to vector<2x96xf32>
    %57 = arith.addf %55, %56 : vector<2x96xf32>
    %58 = vector.extract_strided_slice %54 {offsets = [0, 0], sizes = [2, 32], strides = [1, 1]} : vector<2x96xf32> to vector<2x32xf32>
    %59 = vector.extract_strided_slice %57 {offsets = [0, 0], sizes = [2, 32], strides = [1, 1]} : vector<2x96xf32> to vector<2x32xf32>
    %60 = arith.addf %58, %59 : vector<2x32xf32>
    %61 = arith.negf %60 : vector<2x32xf32>
    %62 = math.exp %61 : vector<2x32xf32>
    %cst_16 = arith.constant 1.000000e+00 : f32
    %63 = vector.broadcast %cst_16 : f32 to vector<2x32xf32>
    %64 = arith.addf %63, %62 : vector<2x32xf32>
    %65 = arith.divf %63, %64 : vector<2x32xf32>
    %66 = vector.extract_strided_slice %54 {offsets = [0, 32], sizes = [2, 32], strides = [1, 1]} : vector<2x96xf32> to vector<2x32xf32>
    %67 = vector.extract_strided_slice %57 {offsets = [0, 32], sizes = [2, 32], strides = [1, 1]} : vector<2x96xf32> to vector<2x32xf32>
    %68 = arith.addf %66, %67 : vector<2x32xf32>
    %69 = arith.negf %68 : vector<2x32xf32>
    %70 = math.exp %69 : vector<2x32xf32>
    %cst_17 = arith.constant 1.000000e+00 : f32
    %71 = vector.broadcast %cst_17 : f32 to vector<2x32xf32>
    %72 = arith.addf %71, %70 : vector<2x32xf32>
    %73 = arith.divf %71, %72 : vector<2x32xf32>
    %74 = vector.extract_strided_slice %54 {offsets = [0, 64], sizes = [2, 32], strides = [1, 1]} : vector<2x96xf32> to vector<2x32xf32>
    %75 = vector.extract_strided_slice %57 {offsets = [0, 64], sizes = [2, 32], strides = [1, 1]} : vector<2x96xf32> to vector<2x32xf32>
    %76 = arith.mulf %65, %75 : vector<2x32xf32>
    %77 = arith.addf %74, %76 : vector<2x32xf32>
    %78 = math.tanh %77 : vector<2x32xf32>
    %cst_18 = arith.constant 1.000000e+00 : f32
    %79 = vector.broadcast %cst_18 : f32 to vector<2x32xf32>
    %80 = arith.subf %79, %73 : vector<2x32xf32>
    %81 = arith.mulf %80, %78 : vector<2x32xf32>
    %82 = arith.mulf %73, %53 : vector<2x32xf32>
    %83 = arith.addf %81, %82 : vector<2x32xf32>
    %84 = vector.extract_strided_slice %22 {offsets = [4, 0], sizes = [2, 96], strides = [1, 1]} : vector<14x96xf32> to vector<2x96xf32>
    %cst_19 = arith.constant dense<0.000000e+00> : vector<2x96xf32>
    %85 = tpu.matmul %83, %7, %cst_19 {dimension_numbers = #tpu.dot_dimension_numbers<[1], [0], [0], [1], [0, 0, 1, 1], [], []>} : vector<2x32xf32>, vector<32x96xf32>, vector<2x96xf32> -> vector<2x96xf32>
    %86 = vector.broadcast %8 : vector<1x96xf32> to vector<2x96xf32>
    %87 = arith.addf %85, %86 : vector<2x96xf32>
    %88 = vector.extract_strided_slice %84 {offsets = [0, 0], sizes = [2, 32], strides = [1, 1]} : vector<2x96xf32> to vector<2x32xf32>
    %89 = vector.extract_strided_slice %87 {offsets = [0, 0], sizes = [2, 32], strides = [1, 1]} : vector<2x96xf32> to vector<2x32xf32>
    %90 = arith.addf %88, %89 : vector<2x32xf32>
    %91 = arith.negf %90 : vector<2x32xf32>
    %92 = math.exp %91 : vector<2x32xf32>
    %cst_20 = arith.constant 1.000000e+00 : f32
    %93 = vector.broadcast %cst_20 : f32 to vector<2x32xf32>
    %94 = arith.addf %93, %92 : vector<2x32xf32>
    %95 = arith.divf %93, %94 : vector<2x32xf32>
    %96 = vector.extract_strided_slice %84 {offsets = [0, 32], sizes = [2, 32], strides = [1, 1]} : vector<2x96xf32> to vector<2x32xf32>
    %97 = vector.extract_strided_slice %87 {offsets = [0, 32], sizes = [2, 32], strides = [1, 1]} : vector<2x96xf32> to vector<2x32xf32>
    %98 = arith.addf %96, %97 : vector<2x32xf32>
    %99 = arith.negf %98 : vector<2x32xf32>
    %100 = math.exp %99 : vector<2x32xf32>
    %cst_21 = arith.constant 1.000000e+00 : f32
    %101 = vector.broadcast %cst_21 : f32 to vector<2x32xf32>
    %102 = arith.addf %101, %100 : vector<2x32xf32>
    %103 = arith.divf %101, %102 : vector<2x32xf32>
    %104 = vector.extract_strided_slice %84 {offsets = [0, 64], sizes = [2, 32], strides = [1, 1]} : vector<2x96xf32> to vector<2x32xf32>
    %105 = vector.extract_strided_slice %87 {offsets = [0, 64], sizes = [2, 32], strides = [1, 1]} : vector<2x96xf32> to vector<2x32xf32>
    %106 = arith.mulf %95, %105 : vector<2x32xf32>
    %107 = arith.addf %104, %106 : vector<2x32xf32>
    %108 = math.tanh %107 : vector<2x32xf32>
    %cst_22 = arith.constant 1.000000e+00 : f32
    %109 = vector.broadcast %cst_22 : f32 to vector<2x32xf32>
    %110 = arith.subf %109, %103 : vector<2x32xf32>
    %111 = arith.mulf %110, %108 : vector<2x32xf32>
    %112 = arith.mulf %103, %83 : vector<2x32xf32>
    %113 = arith.addf %111, %112 : vector<2x32xf32>
    %114 = vector.extract_strided_slice %22 {offsets = [6, 0], sizes = [2, 96], strides = [1, 1]} : vector<14x96xf32> to vector<2x96xf32>
    %cst_23 = arith.constant dense<0.000000e+00> : vector<2x96xf32>
    %115 = tpu.matmul %113, %7, %cst_23 {dimension_numbers = #tpu.dot_dimension_numbers<[1], [0], [0], [1], [0, 0, 1, 1], [], []>} : vector<2x32xf32>, vector<32x96xf32>, vector<2x96xf32> -> vector<2x96xf32>
    %116 = vector.broadcast %8 : vector<1x96xf32> to vector<2x96xf32>
    %117 = arith.addf %115, %116 : vector<2x96xf32>
    %118 = vector.extract_strided_slice %114 {offsets = [0, 0], sizes = [2, 32], strides = [1, 1]} : vector<2x96xf32> to vector<2x32xf32>
    %119 = vector.extract_strided_slice %117 {offsets = [0, 0], sizes = [2, 32], strides = [1, 1]} : vector<2x96xf32> to vector<2x32xf32>
    %120 = arith.addf %118, %119 : vector<2x32xf32>
    %121 = arith.negf %120 : vector<2x32xf32>
    %122 = math.exp %121 : vector<2x32xf32>
    %cst_24 = arith.constant 1.000000e+00 : f32
    %123 = vector.broadcast %cst_24 : f32 to vector<2x32xf32>
    %124 = arith.addf %123, %122 : vector<2x32xf32>
    %125 = arith.divf %123, %124 : vector<2x32xf32>
    %126 = vector.extract_strided_slice %114 {offsets = [0, 32], sizes = [2, 32], strides = [1, 1]} : vector<2x96xf32> to vector<2x32xf32>
    %127 = vector.extract_strided_slice %117 {offsets = [0, 32], sizes = [2, 32], strides = [1, 1]} : vector<2x96xf32> to vector<2x32xf32>
    %128 = arith.addf %126, %127 : vector<2x32xf32>
    %129 = arith.negf %128 : vector<2x32xf32>
    %130 = math.exp %129 : vector<2x32xf32>
    %cst_25 = arith.constant 1.000000e+00 : f32
    %131 = vector.broadcast %cst_25 : f32 to vector<2x32xf32>
    %132 = arith.addf %131, %130 : vector<2x32xf32>
    %133 = arith.divf %131, %132 : vector<2x32xf32>
    %134 = vector.extract_strided_slice %114 {offsets = [0, 64], sizes = [2, 32], strides = [1, 1]} : vector<2x96xf32> to vector<2x32xf32>
    %135 = vector.extract_strided_slice %117 {offsets = [0, 64], sizes = [2, 32], strides = [1, 1]} : vector<2x96xf32> to vector<2x32xf32>
    %136 = arith.mulf %125, %135 : vector<2x32xf32>
    %137 = arith.addf %134, %136 : vector<2x32xf32>
    %138 = math.tanh %137 : vector<2x32xf32>
    %cst_26 = arith.constant 1.000000e+00 : f32
    %139 = vector.broadcast %cst_26 : f32 to vector<2x32xf32>
    %140 = arith.subf %139, %133 : vector<2x32xf32>
    %141 = arith.mulf %140, %138 : vector<2x32xf32>
    %142 = arith.mulf %133, %113 : vector<2x32xf32>
    %143 = arith.addf %141, %142 : vector<2x32xf32>
    %144 = vector.extract_strided_slice %22 {offsets = [8, 0], sizes = [2, 96], strides = [1, 1]} : vector<14x96xf32> to vector<2x96xf32>
    %cst_27 = arith.constant dense<0.000000e+00> : vector<2x96xf32>
    %145 = tpu.matmul %143, %7, %cst_27 {dimension_numbers = #tpu.dot_dimension_numbers<[1], [0], [0], [1], [0, 0, 1, 1], [], []>} : vector<2x32xf32>, vector<32x96xf32>, vector<2x96xf32> -> vector<2x96xf32>
    %146 = vector.broadcast %8 : vector<1x96xf32> to vector<2x96xf32>
    %147 = arith.addf %145, %146 : vector<2x96xf32>
    %148 = vector.extract_strided_slice %144 {offsets = [0, 0], sizes = [2, 32], strides = [1, 1]} : vector<2x96xf32> to vector<2x32xf32>
    %149 = vector.extract_strided_slice %147 {offsets = [0, 0], sizes = [2, 32], strides = [1, 1]} : vector<2x96xf32> to vector<2x32xf32>
    %150 = arith.addf %148, %149 : vector<2x32xf32>
    %151 = arith.negf %150 : vector<2x32xf32>
    %152 = math.exp %151 : vector<2x32xf32>
    %cst_28 = arith.constant 1.000000e+00 : f32
    %153 = vector.broadcast %cst_28 : f32 to vector<2x32xf32>
    %154 = arith.addf %153, %152 : vector<2x32xf32>
    %155 = arith.divf %153, %154 : vector<2x32xf32>
    %156 = vector.extract_strided_slice %144 {offsets = [0, 32], sizes = [2, 32], strides = [1, 1]} : vector<2x96xf32> to vector<2x32xf32>
    %157 = vector.extract_strided_slice %147 {offsets = [0, 32], sizes = [2, 32], strides = [1, 1]} : vector<2x96xf32> to vector<2x32xf32>
    %158 = arith.addf %156, %157 : vector<2x32xf32>
    %159 = arith.negf %158 : vector<2x32xf32>
    %160 = math.exp %159 : vector<2x32xf32>
    %cst_29 = arith.constant 1.000000e+00 : f32
    %161 = vector.broadcast %cst_29 : f32 to vector<2x32xf32>
    %162 = arith.addf %161, %160 : vector<2x32xf32>
    %163 = arith.divf %161, %162 : vector<2x32xf32>
    %164 = vector.extract_strided_slice %144 {offsets = [0, 64], sizes = [2, 32], strides = [1, 1]} : vector<2x96xf32> to vector<2x32xf32>
    %165 = vector.extract_strided_slice %147 {offsets = [0, 64], sizes = [2, 32], strides = [1, 1]} : vector<2x96xf32> to vector<2x32xf32>
    %166 = arith.mulf %155, %165 : vector<2x32xf32>
    %167 = arith.addf %164, %166 : vector<2x32xf32>
    %168 = math.tanh %167 : vector<2x32xf32>
    %cst_30 = arith.constant 1.000000e+00 : f32
    %169 = vector.broadcast %cst_30 : f32 to vector<2x32xf32>
    %170 = arith.subf %169, %163 : vector<2x32xf32>
    %171 = arith.mulf %170, %168 : vector<2x32xf32>
    %172 = arith.mulf %163, %143 : vector<2x32xf32>
    %173 = arith.addf %171, %172 : vector<2x32xf32>
    %174 = vector.extract_strided_slice %22 {offsets = [10, 0], sizes = [2, 96], strides = [1, 1]} : vector<14x96xf32> to vector<2x96xf32>
    %cst_31 = arith.constant dense<0.000000e+00> : vector<2x96xf32>
    %175 = tpu.matmul %173, %7, %cst_31 {dimension_numbers = #tpu.dot_dimension_numbers<[1], [0], [0], [1], [0, 0, 1, 1], [], []>} : vector<2x32xf32>, vector<32x96xf32>, vector<2x96xf32> -> vector<2x96xf32>
    %176 = vector.broadcast %8 : vector<1x96xf32> to vector<2x96xf32>
    %177 = arith.addf %175, %176 : vector<2x96xf32>
    %178 = vector.extract_strided_slice %174 {offsets = [0, 0], sizes = [2, 32], strides = [1, 1]} : vector<2x96xf32> to vector<2x32xf32>
    %179 = vector.extract_strided_slice %177 {offsets = [0, 0], sizes = [2, 32], strides = [1, 1]} : vector<2x96xf32> to vector<2x32xf32>
    %180 = arith.addf %178, %179 : vector<2x32xf32>
    %181 = arith.negf %180 : vector<2x32xf32>
    %182 = math.exp %181 : vector<2x32xf32>
    %cst_32 = arith.constant 1.000000e+00 : f32
    %183 = vector.broadcast %cst_32 : f32 to vector<2x32xf32>
    %184 = arith.addf %183, %182 : vector<2x32xf32>
    %185 = arith.divf %183, %184 : vector<2x32xf32>
    %186 = vector.extract_strided_slice %174 {offsets = [0, 32], sizes = [2, 32], strides = [1, 1]} : vector<2x96xf32> to vector<2x32xf32>
    %187 = vector.extract_strided_slice %177 {offsets = [0, 32], sizes = [2, 32], strides = [1, 1]} : vector<2x96xf32> to vector<2x32xf32>
    %188 = arith.addf %186, %187 : vector<2x32xf32>
    %189 = arith.negf %188 : vector<2x32xf32>
    %190 = math.exp %189 : vector<2x32xf32>
    %cst_33 = arith.constant 1.000000e+00 : f32
    %191 = vector.broadcast %cst_33 : f32 to vector<2x32xf32>
    %192 = arith.addf %191, %190 : vector<2x32xf32>
    %193 = arith.divf %191, %192 : vector<2x32xf32>
    %194 = vector.extract_strided_slice %174 {offsets = [0, 64], sizes = [2, 32], strides = [1, 1]} : vector<2x96xf32> to vector<2x32xf32>
    %195 = vector.extract_strided_slice %177 {offsets = [0, 64], sizes = [2, 32], strides = [1, 1]} : vector<2x96xf32> to vector<2x32xf32>
    %196 = arith.mulf %185, %195 : vector<2x32xf32>
    %197 = arith.addf %194, %196 : vector<2x32xf32>
    %198 = math.tanh %197 : vector<2x32xf32>
    %cst_34 = arith.constant 1.000000e+00 : f32
    %199 = vector.broadcast %cst_34 : f32 to vector<2x32xf32>
    %200 = arith.subf %199, %193 : vector<2x32xf32>
    %201 = arith.mulf %200, %198 : vector<2x32xf32>
    %202 = arith.mulf %193, %173 : vector<2x32xf32>
    %203 = arith.addf %201, %202 : vector<2x32xf32>
    %204 = vector.extract_strided_slice %22 {offsets = [12, 0], sizes = [2, 96], strides = [1, 1]} : vector<14x96xf32> to vector<2x96xf32>
    %cst_35 = arith.constant dense<0.000000e+00> : vector<2x96xf32>
    %205 = tpu.matmul %203, %7, %cst_35 {dimension_numbers = #tpu.dot_dimension_numbers<[1], [0], [0], [1], [0, 0, 1, 1], [], []>} : vector<2x32xf32>, vector<32x96xf32>, vector<2x96xf32> -> vector<2x96xf32>
    %206 = vector.broadcast %8 : vector<1x96xf32> to vector<2x96xf32>
    %207 = arith.addf %205, %206 : vector<2x96xf32>
    %208 = vector.extract_strided_slice %204 {offsets = [0, 0], sizes = [2, 32], strides = [1, 1]} : vector<2x96xf32> to vector<2x32xf32>
    %209 = vector.extract_strided_slice %207 {offsets = [0, 0], sizes = [2, 32], strides = [1, 1]} : vector<2x96xf32> to vector<2x32xf32>
    %210 = arith.addf %208, %209 : vector<2x32xf32>
    %211 = arith.negf %210 : vector<2x32xf32>
    %212 = math.exp %211 : vector<2x32xf32>
    %cst_36 = arith.constant 1.000000e+00 : f32
    %213 = vector.broadcast %cst_36 : f32 to vector<2x32xf32>
    %214 = arith.addf %213, %212 : vector<2x32xf32>
    %215 = arith.divf %213, %214 : vector<2x32xf32>
    %216 = vector.extract_strided_slice %204 {offsets = [0, 32], sizes = [2, 32], strides = [1, 1]} : vector<2x96xf32> to vector<2x32xf32>
    %217 = vector.extract_strided_slice %207 {offsets = [0, 32], sizes = [2, 32], strides = [1, 1]} : vector<2x96xf32> to vector<2x32xf32>
    %218 = arith.addf %216, %217 : vector<2x32xf32>
    %219 = arith.negf %218 : vector<2x32xf32>
    %220 = math.exp %219 : vector<2x32xf32>
    %cst_37 = arith.constant 1.000000e+00 : f32
    %221 = vector.broadcast %cst_37 : f32 to vector<2x32xf32>
    %222 = arith.addf %221, %220 : vector<2x32xf32>
    %223 = arith.divf %221, %222 : vector<2x32xf32>
    %224 = vector.extract_strided_slice %204 {offsets = [0, 64], sizes = [2, 32], strides = [1, 1]} : vector<2x96xf32> to vector<2x32xf32>
    %225 = vector.extract_strided_slice %207 {offsets = [0, 64], sizes = [2, 32], strides = [1, 1]} : vector<2x96xf32> to vector<2x32xf32>
    %226 = arith.mulf %215, %225 : vector<2x32xf32>
    %227 = arith.addf %224, %226 : vector<2x32xf32>
    %228 = math.tanh %227 : vector<2x32xf32>
    %cst_38 = arith.constant 1.000000e+00 : f32
    %229 = vector.broadcast %cst_38 : f32 to vector<2x32xf32>
    %230 = arith.subf %229, %223 : vector<2x32xf32>
    %231 = arith.mulf %230, %228 : vector<2x32xf32>
    %232 = arith.mulf %223, %203 : vector<2x32xf32>
    %233 = arith.addf %231, %232 : vector<2x32xf32>
    %234 = tpu.concatenate %53, %83, %113, %143, %173, %203, %233 in 0 : vector<2x32xf32>, vector<2x32xf32>, vector<2x32xf32>, vector<2x32xf32>, vector<2x32xf32>, vector<2x32xf32>, vector<2x32xf32> -> vector<14x32xf32>
    %cst_39 = arith.constant dense<0.000000e+00> : vector<14x32xf32>
    %235 = tpu.matmul %234, %10, %cst_39 {dimension_numbers = #tpu.dot_dimension_numbers<[1], [0], [0], [1], [0, 0, 1, 1], [], []>} : vector<14x32xf32>, vector<32x32xf32>, vector<14x32xf32> -> vector<14x32xf32>
    %236 = vector.broadcast %11 : vector<1x32xf32> to vector<14x32xf32>
    %237 = arith.addf %235, %236 : vector<14x32xf32>
    %238 = math.tanh %237 : vector<14x32xf32>
    %239 = vector.broadcast %14 : vector<1x32xf32> to vector<14x32xf32>
    %240 = arith.mulf %238, %239 : vector<14x32xf32>
    %cst_40 = arith.constant dense<0.000000e+00> : vector<14xf32>
    %241 = vector.multi_reduction <add>, %240, %cst_40 [1] : vector<14x32xf32> to vector<14xf32>
    %242 = vector.shape_cast %241 : vector<14xf32> to vector<14x1xf32>
    %243 = vector.broadcast %15 : vector<1x1xf32> to vector<14x1xf32>
    %244 = arith.addf %242, %243 : vector<14x1xf32>
    %245 = vector.extract_strided_slice %244 {offsets = [0, 0], sizes = [2, 1], strides = [1, 1]} : vector<14x1xf32> to vector<2x1xf32>
    %246 = vector.extract_strided_slice %244 {offsets = [2, 0], sizes = [2, 1], strides = [1, 1]} : vector<14x1xf32> to vector<2x1xf32>
    %247 = vector.extract_strided_slice %244 {offsets = [4, 0], sizes = [2, 1], strides = [1, 1]} : vector<14x1xf32> to vector<2x1xf32>
    %248 = vector.extract_strided_slice %244 {offsets = [6, 0], sizes = [2, 1], strides = [1, 1]} : vector<14x1xf32> to vector<2x1xf32>
    %249 = vector.extract_strided_slice %244 {offsets = [8, 0], sizes = [2, 1], strides = [1, 1]} : vector<14x1xf32> to vector<2x1xf32>
    %250 = vector.extract_strided_slice %244 {offsets = [10, 0], sizes = [2, 1], strides = [1, 1]} : vector<14x1xf32> to vector<2x1xf32>
    %251 = vector.extract_strided_slice %244 {offsets = [12, 0], sizes = [2, 1], strides = [1, 1]} : vector<14x1xf32> to vector<2x1xf32>
    %252 = tpu.concatenate %245, %246, %247, %248, %249, %250, %251 in 1 : vector<2x1xf32>, vector<2x1xf32>, vector<2x1xf32>, vector<2x1xf32>, vector<2x1xf32>, vector<2x1xf32>, vector<2x1xf32> -> vector<2x7xf32>
    %cst_41 = arith.constant dense<0xFF800000> : vector<2xf32>
    %253 = vector.multi_reduction <maximumf>, %252, %cst_41 [1] : vector<2x7xf32> to vector<2xf32>
    %254 = vector.shape_cast %253 : vector<2xf32> to vector<2x1xf32>
    %255 = vector.broadcast %254 : vector<2x1xf32> to vector<2x7xf32>
    %256 = arith.subf %252, %255 : vector<2x7xf32>
    %257 = math.exp %256 : vector<2x7xf32>
    %cst_42 = arith.constant dense<0.000000e+00> : vector<2xf32>
    %258 = vector.multi_reduction <add>, %257, %cst_42 [1] : vector<2x7xf32> to vector<2xf32>
    %259 = vector.shape_cast %258 : vector<2xf32> to vector<2x1xf32>
    %260 = vector.broadcast %259 : vector<2x1xf32> to vector<2x7xf32>
    %261 = arith.divf %257, %260 : vector<2x7xf32>
    %cst_43 = arith.constant 0.000000e+00 : f32
    %262 = vector.broadcast %cst_43 : f32 to vector<2x32xf32>
    %263 = vector.extract_strided_slice %261 {offsets = [0, 0], sizes = [2, 1], strides = [1, 1]} : vector<2x7xf32> to vector<2x1xf32>
    %264 = vector.broadcast %263 : vector<2x1xf32> to vector<2x32xf32>
    %265 = arith.mulf %53, %264 : vector<2x32xf32>
    %266 = arith.addf %262, %265 : vector<2x32xf32>
    %267 = vector.extract_strided_slice %261 {offsets = [0, 1], sizes = [2, 1], strides = [1, 1]} : vector<2x7xf32> to vector<2x1xf32>
    %268 = vector.broadcast %267 : vector<2x1xf32> to vector<2x32xf32>
    %269 = arith.mulf %83, %268 : vector<2x32xf32>
    %270 = arith.addf %266, %269 : vector<2x32xf32>
    %271 = vector.extract_strided_slice %261 {offsets = [0, 2], sizes = [2, 1], strides = [1, 1]} : vector<2x7xf32> to vector<2x1xf32>
    %272 = vector.broadcast %271 : vector<2x1xf32> to vector<2x32xf32>
    %273 = arith.mulf %113, %272 : vector<2x32xf32>
    %274 = arith.addf %270, %273 : vector<2x32xf32>
    %275 = vector.extract_strided_slice %261 {offsets = [0, 3], sizes = [2, 1], strides = [1, 1]} : vector<2x7xf32> to vector<2x1xf32>
    %276 = vector.broadcast %275 : vector<2x1xf32> to vector<2x32xf32>
    %277 = arith.mulf %143, %276 : vector<2x32xf32>
    %278 = arith.addf %274, %277 : vector<2x32xf32>
    %279 = vector.extract_strided_slice %261 {offsets = [0, 4], sizes = [2, 1], strides = [1, 1]} : vector<2x7xf32> to vector<2x1xf32>
    %280 = vector.broadcast %279 : vector<2x1xf32> to vector<2x32xf32>
    %281 = arith.mulf %173, %280 : vector<2x32xf32>
    %282 = arith.addf %278, %281 : vector<2x32xf32>
    %283 = vector.extract_strided_slice %261 {offsets = [0, 5], sizes = [2, 1], strides = [1, 1]} : vector<2x7xf32> to vector<2x1xf32>
    %284 = vector.broadcast %283 : vector<2x1xf32> to vector<2x32xf32>
    %285 = arith.mulf %203, %284 : vector<2x32xf32>
    %286 = arith.addf %282, %285 : vector<2x32xf32>
    %287 = vector.extract_strided_slice %261 {offsets = [0, 6], sizes = [2, 1], strides = [1, 1]} : vector<2x7xf32> to vector<2x1xf32>
    %288 = vector.broadcast %287 : vector<2x1xf32> to vector<2x32xf32>
    %289 = arith.mulf %233, %288 : vector<2x32xf32>
    %290 = arith.addf %286, %289 : vector<2x32xf32>
    %cst_44 = arith.constant dense<0.000000e+00> : vector<2x2xf32>
    %291 = tpu.matmul %290, %12, %cst_44 {dimension_numbers = #tpu.dot_dimension_numbers<[1], [0], [0], [1], [0, 0, 1, 1], [], []>} : vector<2x32xf32>, vector<32x2xf32>, vector<2x2xf32> -> vector<2x2xf32>
    %292 = vector.broadcast %13 : vector<1x2xf32> to vector<2x2xf32>
    %293 = arith.addf %291, %292 : vector<2x2xf32>
    %c0_45 = arith.constant 0 : index
    %c0_46 = arith.constant 0 : index
    %294 = vector.load %arg6[%c0_45, %c0_46] : memref<2x2xf32, #tpu.memory_space<vmem>>, vector<2x2xf32>
    tpu.vector_store %arg6[%c0_45, %c0_46], %293 {strides = array<i32>} : memref<2x2xf32, #tpu.memory_space<vmem>>, vector<2x2xf32>,
    return
  }
  func.func @transform_0(%arg0: i32) -> (i32, i32) {
    %c0_i32 = arith.constant 0 : i32
    %c0_i32_0 = arith.constant 0 : i32
    %c0_i32_1 = arith.constant 0 : i32
    return %c0_i32, %c0_i32_0 : i32, i32
  }
  func.func @transform_1(%arg0: i32) -> (i32, i32) {
    %c0_i32 = arith.constant 0 : i32
    %c0_i32_0 = arith.constant 0 : i32
    %c0_i32_1 = arith.constant 0 : i32
    return %c0_i32, %c0_i32_0 : i32, i32
  }
  func.func @transform_2(%arg0: i32) -> (i32, i32) {
    %c0_i32 = arith.constant 0 : i32
    %c0_i32_0 = arith.constant 0 : i32
    %c0_i32_1 = arith.constant 0 : i32
    return %c0_i32, %c0_i32_0 : i32, i32
  }
  func.func @transform_3(%arg0: i32) -> (i32, i32) {
    %c0_i32 = arith.constant 0 : i32
    %c0_i32_0 = arith.constant 0 : i32
    %c0_i32_1 = arith.constant 0 : i32
    return %c0_i32, %c0_i32_0 : i32, i32
  }
  func.func @transform_4(%arg0: i32) -> (i32, i32) {
    %c0_i32 = arith.constant 0 : i32
    %c0_i32_0 = arith.constant 0 : i32
    %c0_i32_1 = arith.constant 0 : i32
    return %c0_i32, %c0_i32_0 : i32, i32
  }
  func.func @transform_5(%arg0: i32) -> (i32, i32) {
    %c0_i32 = arith.constant 0 : i32
    %c0_i32_0 = arith.constant 0 : i32
    %c0_i32_1 = arith.constant 0 : i32
    return %c0_i32, %c0_i32_0 : i32, i32
  }
}

</mosaic_0001>

<bundles_post_ra>
// kernel: tpu_custom_call.1
= control target key start
LH: loop header
LB: loop body
LE: loop exit
PB: predicated region body
PF: predicated region fallthrough
CT: control target
= control target key end

     0   :  { %vm56_vm0 = vcmask 916480   ;;  %s2089_s0 = inlined_call_operand.vmem [shape: f32[14,112], index: 0, kind: input, shape index: {}]   ;;  %s2090_s1 = inlined_call_operand.vmem [shape: f32[113,28], index: 1, kind: input, shape index: {}]   ;;  %s2091_s2 = inlined_call_operand.vmem [shape: f32[29,96], index: 2, kind: input, shape index: {}]   ;;  %s2092_s3 = inlined_call_operand.vmem [shape: f32[33,96], index: 3, kind: input, shape index: {}]   ;;  %s2093_s4 = inlined_call_operand.vmem [shape: f32[34,34], index: 4, kind: input, shape index: {}]   ;;  %s2094_s5 = inlined_call_operand.hbm [shape: f32[2,2], index: 5, kind: output, shape index: {}]  }
   0x1   :  { %v21_v0 = vld [vmem:[%s2090_s1] sm:$0xff]  ;;  %v22_v1 = vld [vmem:[%s2090_s1 + $0x8] sm:$0xff]  ;;  %v23_v2 = vld [vmem:[%s2090_s1 + $0x10] sm:$0xff] }
   0x2   :  { %v1534_v3 = vpack.c.bf16 %v22_v1, %v21_v0  ;;  %v24_v4 = vld [vmem:[%s2090_s1 + $0x18] sm:$0xff]  ;;  %v25_v6 = vld [vmem:[%s2090_s1 + $0x20] sm:$0xff]  ;;  %v26_v7 = vld [vmem:[%s2090_s1 + $0x28] sm:$0xff] }
   0x3   :  { %v1538_v5 = vpack.c.bf16 %v24_v4, %v23_v2  ;;  %v50_v8 = vld [vmem:[%s2089_s0] sm:$0xff]  ;;  %v1542_v9 = vpack.c.bf16 %v26_v7, %v25_v6  ;;  %v37_v11 = vld [vmem:[%s2091_s2 + $0x8] sm:$0xff]  ;;  %v27_v12 = vld [vmem:[%s2090_s1 + $0x30] sm:$0xff] }
   0x4   :  { %1535 = vmatprep.subr.bf16.mxu0 %v1534_v3  ;;  %1421 = vmatprep.mubr.msk.f32.mxu0 %vm56_vm0, %v50_v8  ;;  %v36_v10 = vld [vmem:[%s2091_s2] sm:$0xff]  ;;  %v28_v13 = vld [vmem:[%s2090_s1 + $0x38] sm:$0xff] }
   0x5   :  { %1537 = vmatpush3.bf16.msra.mxu0 %v1534_v3  ;;  %v1562_v14 = vpack.c.bf16 %v37_v11, %v36_v10 }
   0x6   :  { %1539 = vmatprep.subr.bf16.mxu0 %v1538_v5 }
   0x7   :  { %10 = vsyncpa [#allocation3], 0  ;;  %1563 = vmatprep.subr.bf16.mxu1 %v1562_v14  ;;  %v1546_v15 = vpack.c.bf16 %v28_v13, %v27_v12  ;;  %v29_v16 = vld [vmem:[%s2090_s1 + $0x40] sm:$0xff]  ;;  %v30_v17 = vld [vmem:[%s2090_s1 + $0x48] sm:$0xff]  ;;  %vm149_vm1 = vcmask 1043456   ;;  %vm1740_vm2 = vmmov 1   ;;  %v138_v42 = vlaneseq }
   0x8   :  { %1565 = vmatpush3.bf16.msra.mxu1 %v1562_v14  ;;  %v1550_v18 = vpack.c.bf16 %v30_v17, %v29_v16  ;;  %v31_v19 = vld [vmem:[%s2090_s1 + $0x50] sm:$0xff]  ;;  %v32_v20 = vld [vmem:[%s2090_s1 + $0x58] sm:$0xff]  ;;  %v33_v22 = vld [vmem:[%s2090_s1 + $0x60] sm:$0xff]  ;;  %v1741_v32 = vmov 0.0|0.0   ;;  %vm1742_vm4 = vmmov 0   ;;  %v1743_v36 = vmov 0.0  }
   0x9   :  { %1541 = vmatpush3.bf16.msra.mxu0 %v1538_v5  ;;  %v1554_v21 = vpack.c.bf16 %v32_v20, %v31_v19  ;;  %v34_v23 = vld [vmem:[%s2090_s1 + $0x68] sm:$0xff]  ;;  %v38_v26 = vld [vmem:[%s2091_s2 + $0x10] sm:$0xff]  ;;  %v39_v27 = vld [vmem:[%s2091_s2 + $0x18] sm:$0x1f]  ;;  %vm142_vm5 = vcmask 228352   ;;  %v1893_v43 = vshrl.u32 %v138_v42, 7 }
   0xa   :  { %1543 = vmatprep.subr.bf16.mxu0 %v1542_v9  ;;  %v1558_v24 = vpack.c.bf16 %v34_v23, %v33_v22  ;;  %v51_v25 = vld [vmem:[%s2089_s0 + $0x8] sm:$0x3f]  ;;  %v1566_v28 = vpack.c.bf16 %v39_v27, %v38_v26  ;;  %vm1567_vm3 = vmpackc.low %vm149_vm1, %vm1740_vm2  ;;  %v40_v29 = vld [vmem:[%s2092_s3] sm:$0xff]  ;;  %s1744_s17 = smov 64   ;;  %vm232_vm6 = vcmask 261120   ;;  %vm963_vm7 = vcmask 1041408  }
   0xb   :  { %v41_v30 = vld [vmem:[%s2092_s3 + $0x8] sm:$0xff]  ;;  %v42_v33 = vld [vmem:[%s2092_s3 + $0x10] sm:$0xff]  ;;  %v43_v34 = vld [vmem:[%s2092_s3 + $0x18] sm:$0xff]  ;;  %v140_v44 = vsub.s32 4, %v1893_v43  ;;  %vm966_vm8 = vcmask 1045504   ;;  %vm1070_vm9 = vcmask 259072  }
   0xc   :  { %1568 = vmatprep.subr.msk.bf16.mxu1 %vm1567_vm3, %v1566_v28  ;;  %v1859_v31 = vpack.c.bf16 %v41_v30, %v40_v29  ;;  %v1871_v35 = vpack.c.bf16 %v43_v34, %v42_v33  ;;  %v1302_v37 = vld [vmem:[%s2090_s1 + $0x70] ss:$0 sm:$0xff]  ;;  %v1903_v50 = vld [vmem:[%s2092_s3 + $0x20] ss:$0 sm:$0xff]  ;;  %s1745_s3 = smov 96   ;;  %s1747_s28 = smov 97  }
   0xd   :  { %1545 = vmatpush3.bf16.msra.mxu0 %v1542_v9  ;;  %1571 = vmatpush3.bf16.msk.msra.mxu1 %vm1567_vm3, %v1566_v28  ;;  %v141_v45 = vrot.slane %v39_v27, %v140_v44  ;;  %s1748_s29 = smov 99   ;;  %s1749_s30 = smov 98   ;;  %vm1104_vm10 = vcmask 7168   ;;  %vm1106_vm11 = vcmask 15360   ;;  %vm1108_vm12 = vcmask 23552  }
   0xe   :  { %1547 = vmatprep.subr.bf16.mxu0 %v1546_v15  ;;  %1572 = vmatprep.subr.bf16.mxu1 %v1741_v32  ;;  %s1750_s6 = smov 101   ;;  %s1751_s7 = smov 102   ;;  %vm1110_vm13 = vcmask 31744   ;;  %vm1112_vm14 = vcmask 39936   ;;  %vm1114_vm15 = vcmask 48128  }
   0xf   :  { %s1759_s8 = smov [#allocation2]  }
  0x10   :  { %s1294_s9 = sshll.u32 %s1759_s8, 4  ;;  %s1295_s9 = int_to_ptr.vmem [resolvable:$true] %s1294_s9 }
  0x11   :  { %1549 = vmatpush3.bf16.msra.mxu0 %v1546_v15  ;;  %s1716_s0 = scalar_lea.vmem %s1295_s9, 32  ;;  %p1721_p1 = scmp.lt.s32.totalorder %s1295_s9, %s1295_s9 }
  0x12   :  { %1551 = vmatprep.subr.bf16.mxu0 %v1550_v18  ;;  %p1717_p0 = scmp.ne.s32.totalorder %s1295_s9, %s1716_s0  ;;  %p1722_p2 = scmp.lt.s32.totalorder %s1716_s0, %s1716_s0 }
  0x14   :  { %p1723_p3 = por %p1722_p2, %p1721_p1 }
  0x15   :  { %1553 = vmatpush3.bf16.msra.mxu0 %v1550_v18 }
  0x16   :  { %1555 = vmatprep.subr.bf16.mxu0 %v1554_v21  ;;  %p1724_p4 = pnand %p1723_p3, %p1717_p0 }
  0x19   :  { %1557 = vmatpush3.bf16.msra.mxu0 %v1554_v21 }
  0x1a   :  { %1559 = vmatprep.subr.bf16.mxu0 %v1558_v24 }
  0x1d   :  { %1561 = vmatpush3.bf16.msra.mxu0 %v1558_v24 }
  0x1e   :  { %1590 = vmatprep.subr.bf16.mxu0 %v1741_v32 }
  0x20   :  { %1422 = vmatmul.mubr.msk.f32.vlgmr.msra.gmra.mrb[0].mxu0 %vm56_vm0, %v51_v25  ;;  %vm1116_vm0 = vcmask 50176  }
  0x21   :  { %1592 = vmatpush3.bf16.msra.mxu0 %v1859_v31  ;;  %1476 = vmatprep.mubr.msk.f32.mxu0 %vm1742_vm4, %v1743_v36 }
  0x22   :  { %1593 = vmatprep.subr.bf16.mxu0 %v1741_v32 }
  0x25   :  { %1595 = vmatpush3.bf16.msra.mxu0 %v1871_v35 }
  0x26   :  { %1602 = vmatprep.subr.bf16.mxu0 %v1741_v32 }
  0xf3   :  { %v1423_v38 = vpop.f32.mrb[0].mxu0 }
  0xf4   :  { %v129_v39 = vpop.f32.mrb[1].mxu0  ;;  %v135_v41 = vadd.f32 %v1423_v38, %v1302_v37 }
  0xf5   :  { %v130_v40 = vadd.f32 %v1302_v37, %v129_v39 }
  0xf7   :  { %1432 = vmatprep.mubr.msk.f32.mxu1 %vm142_vm5, %v130_v40 }
  0xf8   :  { %1433 = vmatmul.mubr.msk.f32.vlgmr.msra.gmra.mrb[0].mxu1 %vm142_vm5, %v135_v41 }
  0xf9   :  { %1574 = vmatpush3.bf16.msra.mxu1 %v1859_v31  ;;  %1443 = vmatprep.mubr.msk.f32.mxu1 %vm1742_vm4, %v1743_v36 }
  0xfa   :  { %1575 = vmatprep.subr.bf16.mxu1 %v1741_v32 }
  0xfd   :  { %1577 = vmatpush3.bf16.msra.mxu1 %v1871_v35 }
  0xfe   :  { %1578 = vmatprep.subr.bf16.mxu1 %v1741_v32 }
 0x100   :  { %1444 = vmatmul.mubr.f32.vlgmr.msra.gmra.mrb[2].mxu1 %v1743_v36 }
 0x101   :  { %1580 = vmatpush3.bf16.msra.mxu1 %v1859_v31  ;;  %1454 = vmatprep.mubr.msk.f32.mxu1 %vm1742_vm4, %v1743_v36 }
 0x102   :  { %1581 = vmatprep.subr.bf16.mxu1 %v1741_v32 }
 0x105   :  { %1583 = vmatpush3.bf16.msra.mxu1 %v1871_v35 }
 0x106   :  { %1584 = vmatprep.subr.bf16.mxu1 %v1741_v32 }
 0x1cb   :  { %v1434_v46 = vpop.f32.mrb[0].mxu1 }
 0x1cc   :  { %v1896_v47 = vadd.f32 %v1434_v46, %v141_v45  ;;  %v219_v48 = vpop.f32.mrb[1].mxu1 }
 0x1cd   :  { %v1898_v49 = vadd.f32 %v219_v48, %v141_v45 }
 0x1d3   :  { %v302_v51 = vpop.f32.mrb[2].mxu1 }
 0x1d4   :  { %v303_v52 = vadd.f32 %v1903_v50, %v302_v51  ;;  %v1445_v53 = vpop.f32.mrb[3].mxu1 }
 0x1d6   :  { %314 = vrot.lane.b32.xlu0 %v303_v52, %s1744_s17  ;;  %v306_v54 = vadd.f32 %v303_v52, %v1898_v49 }
 0x1d8   :  { %v1309_v55 = vmul.f32 -1.442695, %v306_v54 }
 0x1da   :  { %1666 = vpow2.f32 %v1309_v55 }
 0x1e4   :  { %v1667_v56 = vpop.eup %1666 }
 0x1e5   :  { %v310_v57 = vadd.f32 1.0, %v1667_v56 }
 0x1e7   :  { %1668 = vrcp.f32 %v310_v57 }
 0x1f1   :  { %v1669_v58 = vpop.eup %1668 }
 0x1f2   :  { %v324_v0 = vsub.f32 1.0, %v1669_v58  ;;  %v330_v2 = vmul.f32 0.0, %v1669_v58 }
 0x248   :  { %v315_v59 = vpop.permute.xlu0 %314 }
 0x249   :  { %v317_v60 = vmul.f32 %v1669_v58, %v315_v59 }
 0x24b   :  { %319 = vrot.lane.b32.xlu0 %v317_v60, %s1744_s17 }
 0x2bd   :  { %v320_v61 = vpop.permute.xlu0 %319 }
 0x2be   :  { %v322_v62 = vadd.f32 %v320_v61, %v1898_v49 }
 0x2c0   :  { %1670 = vtanh.f32 %v322_v62 }
 0x2ca   :  { %v1671_v63 = vpop.eup %1670 }
 0x2cb   :  { %326 = vrot.lane.b32.xlu1 %v1671_v63, %s1745_s3 }
 0x33d   :  { %v327_v1 = vpop.permute.xlu1 %326 }
 0x33e   :  { %v329_v3 = vmul.f32 %v327_v1, %v324_v0 }
 0x340   :  { %v1911_v4 = vadd.f32 %v330_v2, %v329_v3 }
 0x342   :  { %333 = vrot.lane.b32.xlu1 %v1911_v4, %s1745_s3  ;;  %v433_v21 = vrot.slane %v1911_v4, 6 }
 0x3b4   :  { %v334_v5 = vpop.permute.xlu1 %333 }
 0x3b5   :  { %1455 = vmatmul.mubr.msk.f32.vlgmr.msra.gmra.mrb[4].mxu1 %vm232_vm6, %v334_v5 }
 0x3b6   :  { %1586 = vmatpush3.bf16.msra.mxu1 %v1859_v31  ;;  %1465 = vmatprep.mubr.msk.f32.mxu1 %vm1742_vm4, %v1743_v36 }
 0x3b7   :  { %1587 = vmatprep.subr.bf16.mxu1 %v1741_v32 }
 0x3ba   :  { %1589 = vmatpush3.bf16.msra.mxu1 %v1871_v35 }
 0x3bb   :  { %1596 = vmatprep.subr.bf16.mxu1 %v1741_v32 }
 0x488   :  { %v403_v6 = vpop.f32.mrb[4].mxu1 }
 0x489   :  { %v404_v7 = vadd.f32 %v1903_v50, %v403_v6  ;;  %v1456_v8 = vpop.f32.mrb[5].mxu1 }
 0x48b   :  { %v408_v9 = vrot.slane %v404_v7, 6 }
 0x48d   :  { %417 = vrot.lane.b32.xlu0 %v408_v9, %s1744_s17  ;;  %v410_v10 = vadd.f32 %v408_v9, %v1898_v49 }
 0x48f   :  { %v1311_v11 = vmul.f32 -1.442695, %v410_v10 }
 0x491   :  { %1672 = vpow2.f32 %v1311_v11 }
 0x49b   :  { %v1673_v12 = vpop.eup %1672 }
 0x49c   :  { %v414_v13 = vadd.f32 1.0, %v1673_v12 }
 0x49e   :  { %1674 = vrcp.f32 %v414_v13 }
 0x4a8   :  { %v1675_v14 = vpop.eup %1674 }
 0x4a9   :  { %v427_v20 = vsub.f32 1.0, %v1675_v14  ;;  %v435_v24 = vmul.f32 %v1675_v14, %v433_v21 }
 0x4ff   :  { %v418_v15 = vpop.permute.xlu0 %417 }
 0x500   :  { %v420_v16 = vmul.f32 %v1675_v14, %v418_v15 }
 0x502   :  { %422 = vrot.lane.b32.xlu1 %v420_v16, %s1744_s17 }
 0x574   :  { %v423_v17 = vpop.permute.xlu1 %422 }
 0x575   :  { %v425_v18 = vadd.f32 %v423_v17, %v1898_v49 }
 0x577   :  { %1676 = vtanh.f32 %v425_v18 }
 0x581   :  { %v1677_v19 = vpop.eup %1676 }
 0x582   :  { %429 = vrot.lane.b32.xlu0 %v1677_v19, %s1745_s3 }
 0x5f4   :  { %v430_v22 = vpop.permute.xlu0 %429 }
 0x5f5   :  { %v432_v23 = vmul.f32 %v430_v22, %v427_v20 }
 0x5f7   :  { %v1929_v25 = vadd.f32 %v435_v24, %v432_v23 }
 0x5f9   :  { %v438_v26 = vrot.slane %v1929_v25, 2  ;;  %v539_v51 = vrot.slane %v1929_v25, 6 }
 0x5fb   :  { %439 = vrot.lane.b32.xlu1 %v438_v26, %s1745_s3 }
 0x66d   :  { %v440_v27 = vpop.permute.xlu1 %439 }
 0x66e   :  { %1466 = vmatmul.mubr.msk.f32.vlgmr.msra.gmra.mrb[6].mxu1 %vm232_vm6, %v440_v27 }
 0x66f   :  { %1598 = vmatpush3.bf16.msra.mxu1 %v1859_v31  ;;  %1487 = vmatprep.mubr.msk.f32.mxu1 %vm1742_vm4, %v1743_v36 }
 0x670   :  { %1599 = vmatprep.subr.bf16.mxu1 %v1741_v32 }
 0x673   :  { %1601 = vmatpush3.bf16.msra.mxu1 %v1871_v35 }
 0x674   :  { %1608 = vmatprep.subr.bf16.mxu1 %v1741_v32 }
 0x741   :  { %v509_v28 = vpop.f32.mrb[6].mxu1 }
 0x742   :  { %v510_v29 = vadd.f32 %v1903_v50, %v509_v28  ;;  %v1467_v30 = vpop.f32.mrb[7].mxu1 }
 0x744   :  { %v514_v33 = vrot.slane %v510_v29, 4 }
 0x746   :  { %523 = vrot.lane.b32.xlu0 %v514_v33, %s1744_s17  ;;  %v516_v34 = vadd.f32 %v514_v33, %v1898_v49 }
 0x748   :  { %v1313_v37 = vmul.f32 -1.442695, %v516_v34 }
 0x74a   :  { %1678 = vpow2.f32 %v1313_v37 }
 0x754   :  { %v1679_v38 = vpop.eup %1678 }
 0x755   :  { %v520_v39 = vadd.f32 1.0, %v1679_v38 }
 0x757   :  { %1680 = vrcp.f32 %v520_v39 }
 0x761   :  { %v1681_v40 = vpop.eup %1680 }
 0x762   :  { %v533_v48 = vsub.f32 1.0, %v1681_v40  ;;  %v541_v53 = vmul.f32 %v1681_v40, %v539_v51 }
 0x7b8   :  { %v524_v41 = vpop.permute.xlu0 %523 }
 0x7b9   :  { %v526_v42 = vmul.f32 %v1681_v40, %v524_v41 }
 0x7bb   :  { %528 = vrot.lane.b32.xlu1 %v526_v42, %s1744_s17 }
 0x82d   :  { %v529_v44 = vpop.permute.xlu1 %528 }
 0x82e   :  { %v531_v45 = vadd.f32 %v529_v44, %v1898_v49 }
 0x830   :  { %1682 = vtanh.f32 %v531_v45 }
 0x83a   :  { %v1683_v46 = vpop.eup %1682 }
 0x83b   :  { %535 = vrot.lane.b32.xlu0 %v1683_v46, %s1745_s3 }
 0x8ad   :  { %v536_v52 = vpop.permute.xlu0 %535 }
 0x8ae   :  { %v538_v54 = vmul.f32 %v536_v52, %v533_v48 }
 0x8b0   :  { %v1947_v55 = vadd.f32 %v541_v53, %v538_v54 }
 0x8b2   :  { %v544_v56 = vrot.slane %v1947_v55, 4  ;;  %v645_v10 = vrot.slane %v1947_v55, 6 }
 0x8b4   :  { %545 = vrot.lane.b32.xlu1 %v544_v56, %s1745_s3 }
 0x926   :  { %v546_v57 = vpop.permute.xlu1 %545 }
 0x927   :  { %1477 = vmatmul.mubr.msk.f32.vlgmr.msra.gmra.mrb[2].mxu0 %vm232_vm6, %v546_v57 }
 0x928   :  { %1604 = vmatpush3.bf16.msra.mxu0 %v1859_v31  ;;  %1498 = vmatprep.mubr.msk.f32.mxu0 %vm1742_vm4, %v1743_v36 }
 0x929   :  { %1605 = vmatprep.subr.bf16.mxu0 %v1741_v32 }
 0x92c   :  { %1607 = vmatpush3.bf16.msra.mxu0 %v1871_v35 }
 0x9fa   :  { %v615_v58 = vpop.f32.mrb[2].mxu0 }
 0x9fb   :  { %v616_v59 = vadd.f32 %v1903_v50, %v615_v58  ;;  %v1478_v60 = vpop.f32.mrb[3].mxu0 }
 0x9fd   :  { %v620_v61 = vrot.slane %v616_v59, 2 }
 0x9ff   :  { %629 = vrot.lane.b32.xlu0 %v620_v61, %s1744_s17  ;;  %v622_v62 = vadd.f32 %v620_v61, %v1898_v49 }
 0xa01   :  { %v1315_v63 = vmul.f32 -1.442695, %v622_v62 }
 0xa03   :  { %1684 = vpow2.f32 %v1315_v63 }
 0xa0d   :  { %v1685_v0 = vpop.eup %1684 }
 0xa0e   :  { %v626_v1 = vadd.f32 1.0, %v1685_v0 }
 0xa10   :  { %1686 = vrcp.f32 %v626_v1 }
 0xa1a   :  { %v1687_v2 = vpop.eup %1686 }
 0xa1b   :  { %v639_v9 = vsub.f32 1.0, %v1687_v2  ;;  %v647_v12 = vmul.f32 %v1687_v2, %v645_v10 }
 0xa71   :  { %v630_v3 = vpop.permute.xlu0 %629 }
 0xa72   :  { %v632_v5 = vmul.f32 %v1687_v2, %v630_v3 }
 0xa74   :  { %634 = vrot.lane.b32.xlu1 %v632_v5, %s1744_s17 }
 0xae6   :  { %v635_v6 = vpop.permute.xlu1 %634 }
 0xae7   :  { %v637_v7 = vadd.f32 %v635_v6, %v1898_v49 }
 0xae9   :  { %1688 = vtanh.f32 %v637_v7 }
 0xaf3   :  { %v1689_v8 = vpop.eup %1688 }
 0xaf4   :  { %641 = vrot.lane.b32.xlu0 %v1689_v8, %s1745_s3 }
 0xb66   :  { %v642_v11 = vpop.permute.xlu0 %641 }
 0xb67   :  { %v644_v13 = vmul.f32 %v642_v11, %v639_v9 }
 0xb69   :  { %v1964_v14 = vadd.f32 %v647_v12, %v644_v13 }
 0xb6b   :  { %v650_v15 = vrot.slane %v1964_v14, 6 }
 0xb6d   :  { %651 = vrot.lane.b32.xlu1 %v650_v15, %s1745_s3 }
 0xbdf   :  { %v652_v16 = vpop.permute.xlu1 %651 }
 0xbe0   :  { %1488 = vmatmul.mubr.msk.f32.vlgmr.msra.gmra.mrb[8].mxu1 %vm232_vm6, %v652_v16 }
 0xbe1   :  { %1610 = vmatpush3.bf16.msra.mxu1 %v1859_v31  ;;  %1509 = vmatprep.mubr.msk.f32.mxu1 %vm1742_vm4, %v1743_v36 }
 0xbe2   :  { %1611 = vmatprep.subr.bf16.mxu1 %v1741_v32 }
 0xbe5   :  { %1613 = vmatpush3.bf16.msra.mxu1 %v1871_v35 }
 0xbe6   :  { %1622 = vmatprep.subr.bf16.mxu1 %v1741_v32 }
 0xcb3   :  { %v721_v49 = vpop.f32.mrb[8].mxu1 }
 0xcb4   :  { %v722_v17 = vadd.f32 %v1903_v50, %v721_v49  ;;  %v1489_v18 = vpop.f32.mrb[9].mxu1 }
 0xcb5   :  { %v2021_v18 = vld [vmem:[%s2093_s4 + $0x8] sm:$0xff] }
 0xcb6   :  { %733 = vrot.lane.b32.xlu0 %v722_v17, %s1744_s17  ;;  %v725_v19 = vadd.f32 %v722_v17, %v1896_v47  ;;  %v2016_v17 = vld [vmem:[%s2093_s4] sm:$0xff] }
 0xcb8   :  { %v1317_v20 = vmul.f32 -1.442695, %v725_v19  ;;  %v2026_v19 = vld [vmem:[%s2093_s4 + $0x10] sm:$0xff] }
 0xcba   :  { %1690 = vpow2.f32 %v1317_v20  ;;  %v2033_v20 = vld [vmem:[%s2093_s4 + $0x18] sm:$0xff] }
 0xcc4   :  { %v1691_v31 = vpop.eup %1690 }
 0xcc5   :  { %v729_v21 = vadd.f32 1.0, %v1691_v31  ;;  %v1618_v31 = vpack.c.bf16 %v2033_v20, %v2026_v19 }
 0xcc7   :  { %1692 = vrcp.f32 %v729_v21 }
 0xcd1   :  { %v1693_v22 = vpop.eup %1692 }
 0xcd2   :  { %v743_v28 = vsub.f32 1.0, %v1693_v22  ;;  %v750_v30 = vmul.f32 %v1693_v22, %v650_v15 }
 0xd28   :  { %v734_v23 = vpop.permute.xlu0 %733 }
 0xd29   :  { %v736_v24 = vmul.f32 %v1693_v22, %v734_v23 }
 0xd2b   :  { %738 = vrot.lane.b32.xlu1 %v736_v24, %s1744_s17 }
 0xd9d   :  { %v739_v35 = vpop.permute.xlu1 %738 }
 0xd9e   :  { %v741_v26 = vadd.f32 %v739_v35, %v1896_v47 }
 0xda0   :  { %1694 = vtanh.f32 %v741_v26 }
 0xdaa   :  { %v1695_v27 = vpop.eup %1694 }
 0xdab   :  { %745 = vrot.lane.b32.xlu0 %v1695_v27, %s1745_s3 }
 0xe1d   :  { %v746_v29 = vpop.permute.xlu0 %745 }
 0xe1e   :  { %v748_v33 = vmul.f32 %v746_v29, %v743_v28 }
 0xe20   :  { %v1981_v34 = vadd.f32 %v750_v30, %v748_v33  ;;  %v972_v33 = vsub.s32 0, %v1893_v43 }
 0xe22   :  { %753 = vrot.lane.b32.xlu1 %v1981_v34, %s1745_s3  ;;  %v853_v58 = vrot.slane %v1981_v34, 6 }
 0xe94   :  { %v754_v37 = vpop.permute.xlu1 %753 }
 0xe95   :  { %1499 = vmatmul.mubr.msk.f32.vlgmr.msra.gmra.mrb[4].mxu0 %vm232_vm6, %v754_v37  ;;  %v49_v37 = vld [vmem:[%s2093_s4 + $0x20] sm:$0x3]  ;;  %s1746_s4 = smov 100  }
 0xf68   :  { %v823_v38 = vpop.f32.mrb[4].mxu0 }
 0xf69   :  { %v824_v39 = vadd.f32 %v1903_v50, %v823_v38  ;;  %v1500_v40 = vpop.f32.mrb[5].mxu0  ;;  %v2052_v38 = vrot.slane %v49_v37, %v972_v33  ;;  %v1758_v33 = vmov 4  }
 0xf6b   :  { %v828_v41 = vrot.slane %v824_v39, 6 }
 0xf6d   :  { %837 = vrot.lane.b32.xlu0 %v828_v41, %s1744_s17  ;;  %v830_v42 = vadd.f32 %v828_v41, %v1896_v47 }
 0xf6f   :  { %v1319_v44 = vmul.f32 -1.442695, %v830_v42 }
 0xf71   :  { %1696 = vpow2.f32 %v1319_v44  ;;  %v1063_v44 = vsub.s32 1, %v1893_v43 }
 0xf7b   :  { %v1697_v45 = vpop.eup %1696 }
 0xf7c   :  { %v834_v46 = vadd.f32 1.0, %v1697_v45  ;;  %v1064_v45 = vrot.slane %v49_v37, %v1063_v44  ;;  %v1660_v37 = vpack.i.bf16 %v2033_v20, %v2026_v19 }
 0xf7e   :  { %1698 = vrcp.f32 %v834_v46 }
 0xf88   :  { %v1699_v48 = vpop.eup %1698 }
 0xf89   :  { %v847_v57 = vsub.f32 1.0, %v1699_v48  ;;  %v855_v61 = vmul.f32 %v1699_v48, %v853_v58 }
 0xfdf   :  { %v838_v51 = vpop.permute.xlu0 %837 }
 0xfe0   :  { %v840_v52 = vmul.f32 %v1699_v48, %v838_v51 }
 0xfe2   :  { %842 = vrot.lane.b32.xlu1 %v840_v52, %s1744_s17 }
0x1054   :  { %v843_v53 = vpop.permute.xlu1 %842 }
0x1055   :  { %v845_v54 = vadd.f32 %v843_v53, %v1896_v47 }
0x1057   :  { %1700 = vtanh.f32 %v845_v54 }
0x1061   :  { %v1701_v56 = vpop.eup %1700 }
0x1062   :  { %849 = vrot.lane.b32.xlu0 %v1701_v56, %s1745_s3 }
0x10d4   :  { %v850_v59 = vpop.permute.xlu0 %849 }
0x10d5   :  { %v852_v60 = vmul.f32 %v850_v59, %v847_v57 }
0x10d7   :  { %v1993_v62 = vadd.f32 %v855_v61, %v852_v60 }
0x10d9   :  { %v858_v63 = vrot.slane %v1993_v62, 2  ;;  %v959_v23 = vrot.slane %v1993_v62, 6  ;;  %v968_v28 = vsel %vm963_vm7, %v1981_v34, %v1993_v62 }
0x10db   :  { %859 = vrot.lane.b32.xlu1 %v858_v63, %s1745_s3 }
0x114d   :  { %v860_v0 = vpop.permute.xlu1 %859 }
0x114e   :  { %1510 = vmatmul.mubr.msk.f32.vlgmr.msra.gmra.mrb[10].mxu1 %vm232_vm6, %v860_v0 }
0x114f   :  { %1531 = vmatprep.mubr.msk.f32.mxu1 %vm1742_vm4, %v1743_v36  ;;  %v964_v36 = vsel %vm963_vm7, %v1911_v4, %v1929_v25 }
0x1221   :  { %v929_v1 = vpop.f32.mrb[10].mxu1 }
0x1222   :  { %v930_v2 = vadd.f32 %v1903_v50, %v929_v1  ;;  %v1511_v3 = vpop.f32.mrb[11].mxu1  ;;  %v965_v50 = vsel %vm149_vm1, %v964_v36, %v1947_v55 }
0x1223   :  { %v967_v13 = vsel %vm966_vm8, %v965_v50, %v1964_v14 }
0x1224   :  { %v934_v5 = vrot.slane %v930_v2, 4 }
0x1226   :  { %943 = vrot.lane.b32.xlu0 %v934_v5, %s1744_s17  ;;  %v936_v6 = vadd.f32 %v934_v5, %v1896_v47 }
0x1228   :  { %v1321_v7 = vmul.f32 -1.442695, %v936_v6 }
0x122a   :  { %1702 = vpow2.f32 %v1321_v7 }
0x1234   :  { %v1703_v8 = vpop.eup %1702 }
0x1235   :  { %v940_v9 = vadd.f32 1.0, %v1703_v8 }
0x1237   :  { %1704 = vrcp.f32 %v940_v9 }
0x1241   :  { %v1705_v10 = vpop.eup %1704 }
0x1242   :  { %v953_v22 = vsub.f32 1.0, %v1705_v10  ;;  %v961_v35 = vmul.f32 %v1705_v10, %v959_v23 }
0x1298   :  { %v944_v11 = vpop.permute.xlu0 %943 }
0x1299   :  { %v946_v12 = vmul.f32 %v1705_v10, %v944_v11 }
0x129b   :  { %948 = vrot.lane.b32.xlu1 %v946_v12, %s1744_s17 }
0x129f   :  { %976 = vrot.lane.b32.xlu1 %v967_v13, %s1745_s3 }
0x130d   :  { %v949_v15 = vpop.permute.xlu1 %948 }
0x130e   :  { %v951_v16 = vadd.f32 %v949_v15, %v1896_v47  ;;  %v1614_v47 = vpack.c.bf16 %v2021_v18, %v2016_v17 }
0x1310   :  { %1706 = vtanh.f32 %v951_v16  ;;  %1615 = vmatprep.subr.bf16.mxu0 %v1614_v47 }
0x1311   :  { %v977_v49 = vpop.permute.xlu1 %976  ;;  %1617 = vmatpush3.bf16.msra.mxu0 %v1614_v47 }
0x1312   :  { %1520 = vmatprep.mubr.msk.f32.mxu0 %vm232_vm6, %v977_v49  ;;  %1619 = vmatprep.subr.bf16.mxu0 %v1618_v31 }
0x1315   :  { %1621 = vmatpush3.bf16.msra.mxu0 %v1618_v31 }
0x131a   :  { %v1707_v21 = vpop.eup %1706 }
0x131b   :  { %955 = vrot.lane.b32.xlu0 %v1707_v21, %s1745_s3  ;;  %v1752_v21 = vmov 2  }
0x131c   :  { %1649 = vset.pattern.permute.xlu1 %v1752_v21 }
0x138d   :  { %v956_v24 = vpop.permute.xlu0 %955 }
0x138e   :  { %v958_v26 = vmul.f32 %v956_v24, %v953_v22  ;;  %v1753_v22 = vmov 1  }
0x138f   :  { %1648 = vset.pattern.permute.xlu0 %v1753_v22 }
0x1390   :  { %v2039_v27 = vadd.f32 %v961_v35, %v958_v26  ;;  %v1754_v26 = vmov 0  }
0x1392   :  { %v969_v29 = vsel %vm149_vm1, %v968_v28, %v2039_v27  ;;  %v1755_v28 = vmov 6   ;;  %vm1286_vm1 = vcmask 9216  }
0x1393   :  { %978 = vrot.lane.b32.xlu0 %v969_v29, %s1745_s3  ;;  %v1756_v29 = vmov 3  }
0x1405   :  { %v979_v30 = vpop.permute.xlu0 %978 }
0x1406   :  { %1521 = vmatmul.mubr.msk.f32.vlgmr.msra.gmra.mrb[6].mxu0 %vm232_vm6, %v979_v30  ;;  %v1757_v30 = vmov 5  }
0x14d9   :  { %v1522_v39 = vpop.f32.mrb[6].mxu0 }
0x14da   :  { %v1056_v40 = vadd.f32 %v1522_v39, %v2052_v38  ;;  %v1050_v41 = vpop.f32.mrb[7].mxu0  ;;  %v1655_v39 = vpack.i.bf16 %v2021_v18, %v2016_v17 }
0x14db   :  { %v1051_v42 = vadd.f32 %v1050_v41, %v2052_v38 }
0x14dc   :  { %1708 = vtanh.f32 %v1056_v40 }
0x14dd   :  { %1710 = vtanh.f32 %v1051_v42 }
0x14e6   :  { %v1709_v46 = vpop.eup %1708 }
0x14e7   :  { %v1711_v48 = vpop.eup %1710  ;;  %v1066_v51 = vmul.f32 %v1709_v46, %v1064_v45 }
0x14e8   :  { %v1065_v52 = vmul.f32 %v1711_v48, %v1064_v45 }
0x14e9   :  { %v1071_v53 = vsel %vm1070_vm9, %v1066_v51, 0.0 }
0x14ea   :  { %1072 = vadd.xlane.f32.xlu0 %v1071_v53  ;;  %v1067_v54 = vsel %vm232_vm6, %v1065_v52, 0.0 }
0x14eb   :  { %1068 = vadd.xlane.f32.xlu1 %v1067_v54 }
0x1577   :  { %v1073_v56 = vpop.xlane.xlu0 %1072 }
0x1578   :  { %v1075_v57 = vadd.f32 %v1073_v56, %v1064_v45  ;;  %v1069_v58 = vpop.xlane.xlu1 %1068 }
0x1579   :  { %v1074_v59 = vadd.f32 %v1069_v58, %v1064_v45 }
0x157a   :  { %1093 = vrot.lane.b32.xlu1 %v1075_v57, %s1746_s4  ;;  %v1096_v63 = vrot.slane %v1075_v57, 2  ;;  %v1100_v0 = vrot.slane %v1075_v57, 4 }
0x157b   :  { %1077 = vrot.lane.b32.xlu0 %v1074_v59, %s1745_s3  ;;  %v1080_v43 = vrot.slane %v1074_v59, 2  ;;  %v1088_v60 = vrot.slane %v1074_v59, 6  ;;  %v1084_v61 = vrot.slane %v1074_v59, 4 }
0x157e   :  { %1081 = vrot.lane.b32.xlu1 %v1080_v43, %s1747_s28 }
0x157f   :  { %1089 = vrot.lane.b32.xlu0 %v1088_v60, %s1748_s29 }
0x1582   :  { %1085 = vrot.lane.b32.xlu1 %v1084_v61, %s1749_s30 }
0x1583   :  { %1097 = vrot.lane.b32.xlu0 %v1096_v63, %s1750_s6 }
0x1586   :  { %1101 = vrot.lane.b32.xlu1 %v1100_v0, %s1751_s7 }
0x15ec   :  { %v1094_v1 = vpop.permute.xlu1 %1093 }
0x15ed   :  { %v1078_v2 = vpop.permute.xlu0 %1077 }
0x15f0   :  { %v1082_v3 = vpop.permute.xlu1 %1081 }
0x15f1   :  { %v1090_v5 = vpop.permute.xlu0 %1089  ;;  %v1105_v6 = vsel %vm1104_vm10, %v1078_v2, %v1082_v3 }
0x15f4   :  { %v1086_v7 = vpop.permute.xlu1 %1085 }
0x15f5   :  { %v1107_v8 = vsel %vm1106_vm11, %v1105_v6, %v1086_v7  ;;  %v1098_v10 = vpop.permute.xlu0 %1097 }
0x15f6   :  { %v1109_v9 = vsel %vm1108_vm12, %v1107_v8, %v1090_v5 }
0x15f7   :  { %v1111_v11 = vsel %vm1110_vm13, %v1109_v9, %v1094_v1 }
0x15f8   :  { %v1113_v12 = vsel %vm1112_vm14, %v1111_v11, %v1098_v10  ;;  %v1102_v36 = vpop.permute.xlu1 %1101 }
0x15f9   :  { %v1115_v50 = vsel %vm1114_vm15, %v1113_v12, %v1102_v36 }
0x15fa   :  { %v1117_v13 = vsel %vm1116_vm0, %v1115_v50, -inf }
0x15fb   :  { %1118 = vmax.xlane.f32.xlu0 %v1117_v13 }
0x1688   :  { %v1119_v15 = vpop.xlane.xlu0 %1118 }
0x1689   :  { %v1120_v16 = vsub.f32 %v1115_v50, %v1119_v15 }
0x168b   :  { %v1121_v49 = vmul.f32 1.442695, %v1120_v16 }
0x168d   :  { %1712 = vpow2.f32 %v1121_v49 }
0x1697   :  { %v1713_v47 = vpop.eup %1712 }
0x1698   :  { %v1123_v31 = vsel %vm1116_vm0, %v1713_v47, 0.0 }
0x1699   :  { %1124 = vadd.xlane.f32.xlu1 %v1123_v31 }
0x1726   :  { %v1125_v23 = vpop.xlane.xlu1 %1124 }
0x1727   :  { %1714 = vrcp.f32 %v1125_v23 }
0x1731   :  { %v1715_v24 = vpop.eup %1714 }
0x1732   :  { %v1127_v35 = vmul.f32 %v1715_v24, %v1713_v47 }
0x1734   :  { %1146 = vperm.xlu1 %1649, %v1127_v35   ;;  %1136 = vperm.xlu0 %1648, %v1127_v35  }
0x1738   :  { %1650 = vset.pattern.permute.xlu1 %v1754_v26  ;;  %1665 = vset.pattern.permute.xlu0 %v1755_v28 }
0x1739   :  { %1130 = vperm.xlu1 %1650, %v1127_v35   ;;  %1661 = vrot.lane.b32.xlu0 %v1660_v37, %s1745_s3 }
0x173d   :  { %1651 = vset.pattern.permute.xlu1 %v1756_v29  ;;  %1211 = vrot.lane.b32.xlu0 %v2052_v38, %s1745_s3 }
0x173e   :  { %1156 = vperm.xlu1 %1651, %v1127_v35  }
0x1742   :  { %1652 = vset.pattern.permute.xlu1 %v1757_v30 }
0x1743   :  { %1172 = vperm.xlu1 %1652, %v1127_v35  }
0x1747   :  { %1653 = vset.pattern.permute.xlu1 %v1758_v33 }
0x1748   :  { %1166 = vperm.xlu1 %1653, %v1127_v35  }
0x174c   :  { %1654 = vset.pattern.permute.xlu1 %v1755_v28 }
0x174d   :  { %1182 = vperm.xlu1 %1654, %v1127_v35  }
0x1751   :  { %1656 = vrot.lane.b32.xlu1 %v1655_v39, %s1745_s3 }
0x17b3   :  { %v1147_v40 = vpop.permute.xlu1 %1146  ;;  %v1137_v41 = vpop.permute.xlu0 %1136 }
0x17b4   :  { %v1138_v44 = vrot.slane %v1137_v41, 6  ;;  %v1148_v48 = vrot.slane %v1147_v40, 4 }
0x17b6   :  { %v1140_v45 = vmul.f32 %v1138_v44, %v1929_v25  ;;  %v1150_v18 = vmul.f32 %v1148_v48, %v1947_v55 }
0x17b8   :  { %v1131_v42 = vpop.permute.xlu1 %1130  ;;  %v1142_v20 = vrot.slane %v1140_v45, 2  ;;  %v1152_v54 = vrot.slane %v1150_v18, 4 }
0x17b9   :  { %v1133_v51 = vmul.f32 %v1131_v42, %v1911_v4  ;;  %v1662_v4 = vpop.permute.xlu0 %1661 }
0x17ba   :  { %v1663_v2 = vunpack.i.l.bf16 %v1662_v4 }
0x17bb   :  { %v1144_v53 = vadd.f32 %v1142_v20, %v1133_v51 }
0x17bd   :  { %v1157_v46 = vpop.permute.xlu1 %1156  ;;  %v1154_v58 = vadd.f32 %v1152_v54, %v1144_v53 }
0x17be   :  { %v1158_v19 = vrot.slane %v1157_v46, 2 }
0x17c0   :  { %v1160_v52 = vmul.f32 %v1158_v19, %v1964_v14  ;;  %v1664_v14 = vunpack.i.h.bf16 %v1662_v4 }
0x17c2   :  { %v1173_v17 = vpop.permute.xlu1 %1172  ;;  %v1162_v38 = vrot.slane %v1160_v52, 6 }
0x17c3   :  { %v1174_v56 = vrot.slane %v1173_v17, 6 }
0x17c4   :  { %v1164_v43 = vadd.f32 %v1162_v38, %v1154_v58 }
0x17c5   :  { %v1176_v25 = vmul.f32 %v1174_v56, %v1993_v62 }
0x17c7   :  { %v1167_v57 = vpop.permute.xlu1 %1166  ;;  %v1178_v0 = vrot.slane %v1176_v25, 2 }
0x17c8   :  { %v1169_v59 = vmul.f32 %v1167_v57, %v1981_v34  ;;  %v1626_v34 = vpack.c.bf16 %v1664_v14, %v1663_v2 }
0x17ca   :  { %v1170_v61 = vadd.f32 %v1169_v59, %v1164_v43 }
0x17cc   :  { %v1183_v60 = vpop.permute.xlu1 %1182  ;;  %v1180_v3 = vadd.f32 %v1178_v0, %v1170_v61 }
0x17cd   :  { %v1184_v63 = vrot.slane %v1183_v60, 4 }
0x17cf   :  { %v1186_v55 = vmul.f32 %v1184_v63, %v2039_v27  ;;  %v1212_v27 = vpop.permute.xlu0 %1211 }
0x17d0   :  { %v1657_v1 = vpop.permute.xlu1 %1656 }
0x17d1   :  { %v1188_v5 = vrot.slane %v1186_v55, 4  ;;  %v1659_v6 = vunpack.i.h.bf16 %v1657_v1  ;;  %v1658_v7 = vunpack.i.l.bf16 %v1657_v1 }
0x17d3   :  { %v1190_v8 = vadd.f32 %v1188_v5, %v1180_v3  ;;  %v1623_v9 = vpack.c.bf16 %v1659_v6, %v1658_v7 }
0x17d5   :  { %1192 = vrot.lane.b32.xlu1 %v1190_v8, %s1745_s3  ;;  %1624 = vmatpush3.bf16.msra.mxu1 %v1623_v9 }
0x17d6   :  { %1625 = vmatprep.subr.bf16.mxu1 %v1741_v32 }
0x17d9   :  { %1627 = vmatpush3.bf16.msra.mxu1 %v1626_v34 }
0x1847   :  { %v1193_v62 = vpop.permute.xlu1 %1192 }
0x1848   :  { %1532 = vmatmul.mubr.msk.f32.vlgmr.msra.gmra.mrb[12].mxu1 %vm232_vm6, %v1193_v62 }
0x191b   :  { %v1282_v10 = vpop.f32.mrb[12].mxu1 }
0x191c   :  { %v1283_v11 = vadd.f32 %v1282_v10, %v1212_v27  ;;  %v1533_v12 = vpop.f32.mrb[13].mxu1 }
0x191e   :  { %1287 = vst.msk [vmem:[#allocation2] sm:$0x3] %vm1286_vm1, %v1283_v11 }
0x191f   :  { %1727 = shalt.err (!%p1724_p4)
}
0x1920   :  { %s1728_s11 = scalar_lea.hbm %s2094_s5, 32 }
0x1921   :  { %p1729_p5 = scmp.ne.s32.totalorder %s2094_s5, %s1728_s11  ;;  %p1732_p6 = scmp.lt.u32.totalorder %s1728_s11, %s2094_s5 }
0x1923   :  { %p1734_p7 = pnand %p1732_p6, %p1729_p5 }
0x1925   :  { %1737 = shalt.err (!%p1734_p7)
}
0x1926   :  { %1297 = dma.vmem_to_hbm [thread:$0]  %s1295_s9, 32, %s2094_s5, [#allocation3]  }
0x1927   :  { %1738 = dma.done.wait [#allocation3], 32  }
0x1928   :  { %1739 = vsyncadd [#allocation3], 4294967264 }
0x1929   :  { %1301 = vsyncpa [#allocation3], 1 }

</bundles_post_ra>
